<compile_context>
chip_gen: v7x
topology: tpu7x:2x2x1
jax: 0.10.0
libtpu: 0.0.40
codegen_flags: <defaults>
</compile_context>

<pallas_src>
import jax
import jax.numpy as jnp
from jax.experimental import pallas as pl
from jax.experimental.pallas import tpu as pltpu


def _round_up(x: int, m: int) -> int:
    return ((x + m - 1) // m) * m


def _sublanes(dtype) -> int:
    """Native sublane packing for a dtype: f32 -> 8, bf16 -> 16, int8/fp8 -> 32."""
    return {4: 8, 2: 16, 1: 32}.get(jnp.dtype(dtype).itemsize, 8)


def _pos_gather_kernel(idx_ref, table_ref, out_ref):
    """Gather `tn` rows of the VMEM-resident table into this step's output tile.

    idx_ref   : VMEM (tn, 1) int32  -- positions for this row tile
    table_ref : VMEM (S, E)         -- whole table, resident (constant index_map)
    out_ref   : VMEM (tn, E)        -- gathered rows

    Gather = one-hot(idx) @ table on the MXU: each one-hot row selects exactly
    one table row, there are no cross-sublane shuffles, and the table is read
    from HBM exactly once for the whole call (no per-row DMA descriptors).
    """
    s = table_ref.shape[0]
    idx = idx_ref[...]                                      # (tn, 1) int32
    pos = jax.lax.broadcasted_iota(jnp.int32, (1, s), 1)    # (1, S)
    onehot = (idx == pos).astype(table_ref.dtype)           # (tn, S)
    acc = jnp.dot(
        onehot,
        table_ref[...],
        preferred_element_type=jnp.float32,
        precision=jax.lax.Precision.HIGHEST,                # exact f32 gather
    )
    out_ref[...] = acc.astype(out_ref.dtype)


def _gather_rows(idx_flat, table, *, tile_rows: int = 256):
    """idx_flat: (N,) int -> (N, E) gathered rows of table (S, E)."""
    (n,) = idx_flat.shape
    s, e = table.shape
    itemsize = jnp.dtype(table.dtype).itemsize
    subl = _sublanes(table.dtype)

    # torch indexing raises on out-of-range positions; a Pallas kernel cannot
    # raise, so indices are clamped into [0, S) (documented deviation).
    idx_flat = jnp.clip(idx_flat.astype(jnp.int32), 0, s - 1)

    # Row-tile size: large enough to amortize per-grid-step overhead, aligned
    # to the output dtype's native sublane packing for unmasked stores.
    tn = min(tile_rows, _round_up(n, subl))
    tn = max(subl, _round_up(tn, subl))
    n_pad = _round_up(n, tn)
    if n_pad != n:                       # padded tail rows gather row 0; sliced off below
        idx_flat = jnp.pad(idx_flat, (0, n_pad - n))
    idx2d = idx_flat.reshape(n_pad, 1)

    # VMEM budget: resident table (conservatively x2 in case the pipeline
    # double-buffers it) + double-buffered idx/out tiles. Must fit the
    # smallest generation (v7x: 64 MiB/TC), so guard at 48 MiB.
    e_lanes = _round_up(e, 128)
    table_bytes = _round_up(s, subl) * e_lanes * itemsize
    tile_bytes = tn * 128 * 4 + tn * e_lanes * itemsize
    needed = 2 * table_bytes + 2 * tile_bytes + (1 << 20)
    if needed > (48 << 20):
        # TODO(synk): for tables too large to sit in VMEM, fall back to a
        # scalar-prefetch-driven HBM row-DMA gather with deep pipelining.
        raise NotImplementedError(
            f"positional table ({table_bytes} padded bytes) too large for the "
            "VMEM-resident gather path")
    vmem_limit = int(min(96 << 20, max(32 << 20, needed)))

    out = pl.pallas_call(
        _pos_gather_kernel,
        out_shape=jax.ShapeDtypeStruct((n_pad, e), table.dtype),
        grid_spec=pltpu.PrefetchScalarGridSpec(
            num_scalar_prefetch=0,
            grid=(n_pad // tn,),
            in_specs=[
                pl.BlockSpec((tn, 1), lambda i: (i, 0)),   # positions tile
                pl.BlockSpec((s, e), lambda i: (0, 0)),    # table: resident in VMEM
            ],
            out_specs=pl.BlockSpec((tn, e), lambda i: (i, 0)),
        ),
        compiler_params=pltpu.CompilerParams(
            # Row tiles are independent -> v7x can shard them across both TCs.
            dimension_semantics=("parallel",),
            vmem_limit_bytes=vmem_limit,
        ),
        cost_estimate=pl.CostEstimate(
            flops=2 * n_pad * s * e,
            transcendentals=0,
            bytes_accessed=table_bytes + n_pad * 4 + n_pad * e * itemsize,
        ),
    )(idx2d, table)

    return out[:n] if n_pad != n else out


def positional_encoder(idxs, table, *, tile_rows: int = 256,
                       positions_shared_across_batch: bool = False):
    """idxs: (B, T) int; table: (seq_len, emb_dim) -> (B, T, emb_dim)."""
    b, t = idxs.shape
    _, e = table.shape

    if positions_shared_across_batch:
        # Every batch row uses idxs[0]: gather the T unique rows once in the
        # kernel and broadcast over B outside it (B-fold fewer gathered rows).
        flat = _gather_rows(idxs[0], table, tile_rows=tile_rows)        # (T, E)
        return jnp.broadcast_to(flat[None], (b, t, e))

    flat = _gather_rows(idxs.reshape(b * t), table, tile_rows=tile_rows)
    return flat.reshape(b, t, e)


def positional_encoder_arange(batch: int, t: int, table):
    """nanoGPT arange positions (0..T-1 for every batch row): contiguous rows
    need no gather at all — a plain slice + broadcast is already at roofline."""
    _, e = table.shape
    return jnp.broadcast_to(table[None, :t, :], (batch, t, e))


if __name__ == "__main__":
    # Small shapes implied by the module: seq_len=8 positions, emb_dim=32.
    B, T = 2, 8
    SEQ_LEN, EMB_DIM = 8, 32

    key = jax.random.PRNGKey(0)
    k_tab, k_idx = jax.random.split(key)

    # Deterministic "learned" positional embedding table (synthetic init).
    table = jax.random.normal(k_tab, (SEQ_LEN, EMB_DIM), dtype=jnp.float32) * 0.02

    # 1) Arbitrary per-(batch, step) positions -> VMEM-resident gather kernel.
    idxs = jax.random.randint(k_idx, (B, T), 0, SEQ_LEN, dtype=jnp.int32)
    out = positional_encoder(idxs, table)
    jax.block_until_ready(out)
    ref = table[idxs]
    assert out.shape == (B, T, EMB_DIM)
    assert jnp.allclose(out, ref, atol=1e-6, rtol=0), "mismatch vs reference gather"

    # 2) Shared (identical per batch row) positions -> gather T unique rows once.
    pos = jnp.broadcast_to(jnp.arange(T, dtype=jnp.int32), (B, T))
    out2 = positional_encoder(pos, table, positions_shared_across_batch=True)
    jax.block_until_ready(out2)
    assert jnp.allclose(out2, table[pos], atol=1e-6, rtol=0), "mismatch on shared path"

    # 3) Pure arange fast path (per review): contiguous slice + broadcast, no kernel.
    out3 = positional_encoder_arange(B, T, table)
    jax.block_until_ready(out3)
    assert jnp.allclose(out3, table[pos], atol=1e-6, rtol=0), "mismatch on arange path"

    print("KERNEL_OK")
</pallas_src>

<mosaic_0001>
module attributes {stable_mosaic.version = 11 : i64} {
  func.func @_pos_gather_kernel(%arg0: i32, %arg1: memref<16x1xi32, #tpu.memory_space<vmem>>, %arg2: memref<8x32xf32, #tpu.memory_space<vmem>>, %arg3: memref<16x32xf32, #tpu.memory_space<vmem>>) attributes {dimension_semantics = [#tpu.dimension_semantics<parallel>], iteration_bounds = array<i64: 1>, scalar_prefetch = 0 : i64, scratch_operands = 0 : i64, tpu.core_type = #tpu.core_type<tc>, window_params = [{transform_indices = @transform_0, window_bounds = array<i64: 16, 1>}, {pipeline_mode = #tpu.pipeline_mode<synchronous>, transform_indices = @transform_1, window_bounds = array<i64: 8, 32>}, {transform_indices = @transform_2, window_bounds = array<i64: 16, 32>}]} {
    %c0 = arith.constant 0 : index
    %c0_0 = arith.constant 0 : index
    %0 = vector.load %arg1[%c0, %c0_0] : memref<16x1xi32, #tpu.memory_space<vmem>>, vector<16x1xi32>
    %1 = tpu.iota {dimensions = array<i32: 1>} : vector<1x8xi32>
    %2 = vector.broadcast %0 : vector<16x1xi32> to vector<16x8xi32>
    %3 = vector.broadcast %1 : vector<1x8xi32> to vector<16x8xi32>
    %4 = arith.cmpi eq, %2, %3 : vector<16x8xi32>
    %5 = arith.extui %4 : vector<16x8xi1> to vector<16x8xi32>
    %6 = arith.sitofp %5 : vector<16x8xi32> to vector<16x8xf32>
    %c0_1 = arith.constant 0 : index
    %c0_2 = arith.constant 0 : index
    %7 = vector.load %arg2[%c0_1, %c0_2] : memref<8x32xf32, #tpu.memory_space<vmem>>, vector<8x32xf32>
    %cst = arith.constant dense<0.000000e+00> : vector<16x32xf32>
    %8 = tpu.matmul %6, %7, %cst {dimension_numbers = #tpu.dot_dimension_numbers<[1], [0], [0], [1], [0, 0, 1, 1], [], []>, precision = #tpu.contract_precision<fp32>} : vector<16x8xf32>, vector<8x32xf32>, vector<16x32xf32> -> vector<16x32xf32>
    %c0_3 = arith.constant 0 : index
    %c0_4 = arith.constant 0 : index
    %9 = vector.load %arg3[%c0_3, %c0_4] : memref<16x32xf32, #tpu.memory_space<vmem>>, vector<16x32xf32>
    tpu.vector_store %arg3[%c0_3, %c0_4], %8 {strides = array<i32>} : memref<16x32xf32, #tpu.memory_space<vmem>>, vector<16x32xf32>,
    return
  }
  func.func @transform_0(%arg0: i32) -> (i32, i32) {
    %c0_i32 = arith.constant 0 : i32
    %c0_i32_0 = arith.constant 0 : i32
    return %arg0, %c0_i32 : i32, i32
  }
  func.func @transform_1(%arg0: i32) -> (i32, i32) {
    %c0_i32 = arith.constant 0 : i32
    %c0_i32_0 = arith.constant 0 : i32
    %c0_i32_1 = arith.constant 0 : i32
    return %c0_i32, %c0_i32_0 : i32, i32
  }
  func.func @transform_2(%arg0: i32) -> (i32, i32) {
    %c0_i32 = arith.constant 0 : i32
    %c0_i32_0 = arith.constant 0 : i32
    return %arg0, %c0_i32 : i32, i32
  }
}

</mosaic_0001>

<bundles_post_ra>
// kernel: tpu_custom_call.1
= control target key start
LH: loop header
LB: loop body
LE: loop exit
PB: predicated region body
PF: predicated region fallthrough
CT: control target
= control target key end

     0   :  { %v640_v1 = vmov 0   ;;  %s689_s0 = inlined_call_operand.vmem [shape: s32[16,1], index: 0, kind: input, shape index: {}]   ;;  %s690_s1 = inlined_call_operand.vmem [shape: f32[8,32], index: 1, kind: input, shape index: {}]   ;;  %s691_s2 = inlined_call_operand.hbm [shape: f32[16,32], index: 2, kind: output, shape index: {}]  }
   0x1   :  { %v12_v0 = vld [vmem:[%s689_s0] sm:$0xff]  ;;  %615 = vset.pattern.permute.xlu0 %v640_v1 }
   0x2   :  { %7 = vsyncpa [#allocation3], 0  ;;  %17 = vperm.xlu0 %615, %v12_v0   ;;  %v13_v2 = vld [vmem:[%s689_s0 + $0x8] sm:$0xff]  ;;  %v28_v3 = vld [vmem:[%s690_s1] sm:$0xff]  ;;  %v14_v9 = vlaneseq  ;;  %vm29_vm0 = vcmask 64512   ;;  %v641_v12 = vmov 0.0  }
   0x3   :  { %v37_v4 = vand.u32 4294901760, %v28_v3  ;;  %s642_s0 = smov [#allocation2]   ;;  %vm525_vm3 = vcmask 261120  }
   0x4   :  { %v15_v10 = vand.u32 127, %v14_v9  ;;  %s533_s1 = sshll.u32 %s642_s0, 4  ;;  %s534_s1 = int_to_ptr.vmem [resolvable:$true] %s533_s1 }
   0x5   :  { %585 = vmatprep.subr.mxu0 %v37_v4  ;;  %570 = vmatprep.subr.mxu1 %v37_v4  ;;  %v124_v5 = vsub.f32 %v28_v3, %v37_v4  ;;  %s616_s15 = scalar_lea.vmem %s534_s1, 256  ;;  %p621_p1 = scmp.lt.s32.totalorder %s534_s1, %s534_s1 }
   0x6   :  { %20 = vperm.xlu0 %615, %v13_v2   ;;  %586 = vmatpush3.msra.mxu0 %v37_v4  ;;  %p617_p0 = scmp.ne.s32.totalorder %s534_s1, %s616_s15  ;;  %p622_p2 = scmp.lt.s32.totalorder %s616_s15, %s616_s15 }
   0x7   :  { %571 = vmatpush3.msra.mxu1 %v37_v4  ;;  %v125_v6 = vand.u32 4294901760, %v124_v5 }
   0x8   :  { %p623_p3 = por %p622_p2, %p621_p1 }
   0x9   :  { %v126_v7 = vsub.f32 %v124_v5, %v125_v6  ;;  %590 = vmatprep.subr.mxu0 %v125_v6 }
   0xa   :  { %p624_p4 = pnand %p623_p3, %p617_p0 }
   0xb   :  { %v127_v8 = vand.u32 4294901760, %v126_v7 }
   0xd   :  { %575 = vmatprep.subr.mxu1 %v127_v8 }
  0x81   :  { %v18_v11 = vpop.permute.xlu0 %17 }
  0x82   :  { %vm22_vm1 = vcmp.eq.s32.totalorder %v18_v11, %v15_v10 }
  0x83   :  { %v544_v13 = vsel %vm22_vm1, 1.0, %v641_v12 }
  0x84   :  { %v31_v14 = vsel %vm29_vm0, %v544_v13, 0 }
  0x85   :  { %v103_v15 = vsub.f32 %v31_v14, %v31_v14  ;;  %v21_v16 = vpop.permute.xlu0 %20 }
  0x86   :  { %vm23_vm2 = vcmp.eq.s32.totalorder %v21_v16, %v15_v10 }
  0x87   :  { %v545_v17 = vsel %vm23_vm2, 1.0, %v641_v12  ;;  %v104_v18 = vand.u32 4294901760, %v103_v15 }
  0x88   :  { %v34_v19 = vsel %vm29_vm0, %v545_v17, 0 }
  0x89   :  { %v113_v20 = vsub.f32 %v34_v19, %v34_v19  ;;  %587 = vmatprep.mubr.f32.mxu0 %v104_v18  ;;  %v105_v21 = vsub.f32 %v103_v15, %v104_v18 }
  0x8b   :  { %v106_v22 = vand.u32 4294901760, %v105_v21  ;;  %v114_v23 = vand.u32 4294901760, %v113_v20 }
  0x8d   :  { %572 = vmatprep.mubr.f32.mxu1 %v106_v22  ;;  %588 = vmatmul.mubr.f32.vlgmr.msra.gmra.mrb[0].mxu0 %v114_v23  ;;  %v115_v24 = vsub.f32 %v113_v20, %v114_v23 }
  0x8e   :  { %592 = vmatprep.mubr.msk.f32.mxu0 %vm29_vm0, %v544_v13  ;;  %591 = vmatpush3.msra.mxu0 %v125_v6 }
  0x8f   :  { %v116_v25 = vand.u32 4294901760, %v115_v24  ;;  %595 = vmatprep.subr.mxu0 %v37_v4 }
  0x91   :  { %573 = vmatmul.mubr.f32.vlgmr.msra.gmra.mrb[0].mxu1 %v116_v25 }
  0x92   :  { %576 = vmatpush3.msra.mxu1 %v127_v8  ;;  %577 = vmatprep.mubr.msk.f32.mxu1 %vm29_vm0, %v544_v13 }
  0x93   :  { %580 = vmatprep.subr.mxu1 %v124_v5 }
  0x95   :  { %593 = vmatmul.mubr.msk.f32.vlgmr.msra.gmra.mrb[0].mxu0 %vm29_vm0, %v545_v17 }
  0x96   :  { %597 = vmatprep.mubr.msk.f32.mxu0 %vm29_vm0, %v544_v13  ;;  %596 = vmatpush3.msra.mxu0 %v37_v4 }
  0x99   :  { %578 = vmatmul.mubr.msk.f32.vlgmr.msra.gmra.mrb[0].mxu1 %vm29_vm0, %v545_v17 }
  0x9a   :  { %581 = vmatpush3.msra.mxu1 %v124_v5  ;;  %582 = vmatprep.mubr.f32.mxu1 %v103_v15 }
  0x9d   :  { %598 = vmatmul.mubr.msk.f32.vlgmr.msra.gmra.mrb[0].mxu0 %vm29_vm0, %v545_v17 }
  0xa1   :  { %583 = vmatmul.mubr.f32.vlgmr.msra.gmra.mrb[0].mxu1 %v113_v20 }
 0x170   :  { %v599_v26 = vpop.f32.mrb[0].mxu0 }
 0x171   :  { %v515_v27 = vpop.f32.mrb[1].mxu0 }
 0x174   :  { %v584_v28 = vpop.f32.mrb[0].mxu1 }
 0x175   :  { %v600_v29 = vadd.f32 %v599_v26, %v584_v28  ;;  %v274_v30 = vpop.f32.mrb[1].mxu1 }
 0x176   :  { %v601_v31 = vadd.f32 %v515_v27, %v274_v30 }
 0x177   :  { %527 = vst.msk [vmem:[#allocation2 + $0x8] sm:$0xff] %vm525_vm3, %v600_v29 }
 0x178   :  { %526 = vst.msk [vmem:[#allocation2] sm:$0xff] %vm525_vm3, %v601_v31 }
 0x179   :  { %627 = shalt.err (!%p624_p4)
}
 0x17a   :  { %s628_s18 = scalar_lea.hbm %s691_s2, 256 }
 0x17b   :  { %p629_p5 = scmp.ne.s32.totalorder %s691_s2, %s628_s18  ;;  %p632_p6 = scmp.lt.u32.totalorder %s628_s18, %s691_s2 }
 0x17d   :  { %p634_p7 = pnand %p632_p6, %p629_p5 }
 0x17f   :  { %637 = shalt.err (!%p634_p7)
}
 0x180   :  { %s643_s23 = smov 128   ;;  %s644_s24 = smov 8  }
 0x181   :  { %539 = dma.vmem_to_hbm [thread:$0]  %s534_s1, 256, %s691_s2, [#allocation3], %s643_s23, %s643_s23, %s644_s24  }
 0x182   :  { %638 = dma.done.wait [#allocation3], 256  }
 0x183   :  { %639 = vsyncadd [#allocation3], 4294967040 }
 0x184   :  { %543 = vsyncpa [#allocation3], 1 }

</bundles_post_ra>
